<compile_context>
chip_gen: v7x
topology: tpu7x:2x2x1
jax: 0.10.0
libtpu: 0.0.40
codegen_flags: <defaults>
</compile_context>

<pallas_src>
import functools

import jax
import jax.numpy as jnp
from jax.experimental import pallas as pl
from jax.experimental.pallas import tpu as pltpu


# ---------------------------------------------------------------------------
# Single-pass kernel: one (B_blk, C, T) block per grid step.
# ---------------------------------------------------------------------------
def _se_single_pass_kernel(x_ref, w1_ref, b1_ref, w2_ref, b2_ref, o_ref, *, inv_t):
    # Squeeze: per-(row, channel) mean over time, f32 accumulation.  The block
    # is read again below for the gated store, so no block-sized f32 copy has
    # to stay live across the excitation MLP (keeps the kernel DMA-bound).
    mean = jnp.sum(x_ref[...].astype(jnp.float32), axis=2) * inv_t        # (Bb, C)

    # Excitation MLP: Linear -> ReLU -> Linear -> sigmoid.  Tiny; off the
    # critical path of this HBM-bound kernel.
    h = jnp.dot(mean, w1_ref[...], preferred_element_type=jnp.float32) + b1_ref[...]
    h = jnp.maximum(h, 0.0)                                               # (Bb, D)
    s = jnp.dot(h, w2_ref[...], preferred_element_type=jnp.float32) + b2_ref[...]
    s = jax.nn.sigmoid(s)                                                 # (Bb, C)

    # Scale: re-read x, broadcast gate over time, store in the I/O dtype.
    o_ref[...] = (x_ref[...].astype(jnp.float32) * s[:, :, None]).astype(o_ref.dtype)


# ---------------------------------------------------------------------------
# Two-pass kernel for large C*T: grid = (B_tiles, 2 phases, T_tiles).
# Phase 0 accumulates the per-channel time-sum; the gate is computed once at
# the phase boundary; phase 1 applies the gate tile by tile.
# ---------------------------------------------------------------------------
def _se_two_pass_kernel(x_ref, w1_ref, b1_ref, w2_ref, b2_ref, o_ref,
                        sum_ref, gate_ref, *, inv_t, t_tile, t_true, needs_mask):
    phase = pl.program_id(1)
    t = pl.program_id(2)

    @pl.when(jnp.logical_and(phase == 0, t == 0))
    def _():
        sum_ref[...] = jnp.zeros_like(sum_ref)

    @pl.when(phase == 0)
    def _():
        x = x_ref[...].astype(jnp.float32)
        if needs_mask:
            # Last T tile is partial: exclude stale lanes so the mean over the
            # true T stays exact.
            lane = jax.lax.broadcasted_iota(jnp.int32, x.shape, 2)
            x = jnp.where(t * t_tile + lane < t_true, x, 0.0)
        sum_ref[...] += jnp.sum(x, axis=2)

    @pl.when(jnp.logical_and(phase == 1, t == 0))
    def _():
        mean = sum_ref[...] * inv_t
        h = jnp.dot(mean, w1_ref[...], preferred_element_type=jnp.float32) + b1_ref[...]
        h = jnp.maximum(h, 0.0)
        s = jnp.dot(h, w2_ref[...], preferred_element_type=jnp.float32) + b2_ref[...]
        gate_ref[...] = jax.nn.sigmoid(s)

    @pl.when(phase == 1)
    def _():
        o_ref[...] = (x_ref[...].astype(jnp.float32)
                      * gate_ref[...][:, :, None]).astype(o_ref.dtype)


def _vmem_budget_bytes():
    # ~75% of the chip's VMEM: ≈96 MiB on v5e/v6e (128 MiB), ≈48 MiB on v7x
    # (64 MiB) -- leaves headroom for compiler scratch on every generation.
    try:
        cap = int(pltpu.get_tpu_info().vmem_capacity_bytes)
    except Exception:
        cap = 64 << 20
    return cap * 3 // 4


def se_connect(x, w1, b1, w2, b2, *, force_two_pass=False):
    """SE_Connect forward: x * sigmoid(W2 relu(W1 mean_t(x) + b1) + b2)[:, :, None].

    x: (B, C, T); w1: (C, D); b1: (1, D); w2: (D, C); b2: (1, C).
    x / output may be float32 or bfloat16; internal math is float32.
    """
    B, C, T = x.shape
    D = w1.shape[1]
    itemsize = jnp.dtype(x.dtype).itemsize

    budget = _vmem_budget_bytes()
    weight_bytes = 2 * (C * D + D + D * C + C) * 4     # resident weights (x2 buffers)
    headroom = 2 << 20
    target_blk_bytes = 2 << 20                          # ~2 MiB x-block ≈ HBM roofline

    # ---- batch rows per grid step --------------------------------------------
    row_bytes = C * T * itemsize
    b_blk = max(1, min(B, target_blk_bytes // max(1, row_bytes)))
    if B >= 2:
        # Keep >= 2 steps on the parallel batch axis so both v7x TCs get work.
        b_blk = min(b_blk, (B + 1) // 2)
    while b_blk > 1 and 4 * b_blk * row_bytes + weight_bytes + headroom > budget:
        b_blk -= 1

    single_pass_ok = (4 * b_blk * row_bytes + weight_bytes + headroom) <= budget

    if single_pass_ok and not force_two_pass:
        kernel = functools.partial(_se_single_pass_kernel, inv_t=1.0 / T)
        return pl.pallas_call(
            kernel,
            out_shape=jax.ShapeDtypeStruct((B, C, T), x.dtype),
            grid=(pl.cdiv(B, b_blk),),
            in_specs=[
                # Full-extent C and T blocks: legal for any T, so ragged T needs
                # no wrapper-side pad/slice HBM passes.
                pl.BlockSpec((b_blk, C, T), lambda b: (b, 0, 0)),
                pl.BlockSpec((C, D), lambda b: (0, 0)),
                pl.BlockSpec((1, D), lambda b: (0, 0)),
                pl.BlockSpec((D, C), lambda b: (0, 0)),
                pl.BlockSpec((1, C), lambda b: (0, 0)),
            ],
            out_specs=pl.BlockSpec((b_blk, C, T), lambda b: (b, 0, 0)),
            compiler_params=pltpu.CompilerParams(
                dimension_semantics=("parallel",),
                vmem_limit_bytes=budget,
            ),
        )(x, w1, b1, w2, b2)

    # ---- two-pass fallback: T-tiled, bounded VMEM, deep grid ------------------
    scratch_bytes = 2 * b_blk * max(C, 128) * 4
    padded_t = ((T + 127) // 128) * 128
    t_tile = 128

    def _fits(tt):
        vmem = 4 * b_blk * C * tt * itemsize + weight_bytes + scratch_bytes + headroom
        return vmem <= budget and b_blk * C * tt * itemsize <= target_blk_bytes

    while t_tile * 2 <= padded_t and _fits(t_tile * 2):
        t_tile *= 2
    # TODO(synk): if even a (1, C, 128) block exceeds the budget (very large C),
    # add channel tiling on top of the time tiling.

    needs_mask = (T % t_tile) != 0
    kernel = functools.partial(
        _se_two_pass_kernel, inv_t=1.0 / T, t_tile=t_tile, t_true=T,
        needs_mask=needs_mask)

    return pl.pallas_call(
        kernel,
        out_shape=jax.ShapeDtypeStruct((B, C, T), x.dtype),
        grid=(pl.cdiv(B, b_blk), 2, pl.cdiv(T, t_tile)),
        in_specs=[
            pl.BlockSpec((b_blk, C, t_tile), lambda b, p, t: (b, 0, t)),
            pl.BlockSpec((C, D), lambda b, p, t: (0, 0)),
            pl.BlockSpec((1, D), lambda b, p, t: (0, 0)),
            pl.BlockSpec((D, C), lambda b, p, t: (0, 0)),
            pl.BlockSpec((1, C), lambda b, p, t: (0, 0)),
        ],
        # Phase 0 pins the output block index (t*p == 0), so nothing is written
        # back until the gate exists; phase 1 streams the scaled tiles out.
        out_specs=pl.BlockSpec((b_blk, C, t_tile), lambda b, p, t: (b, 0, t * p)),
        scratch_shapes=[
            pltpu.VMEM((b_blk, C), jnp.float32),    # running per-channel sum
            pltpu.VMEM((b_blk, C), jnp.float32),    # sigmoid gate
        ],
        compiler_params=pltpu.CompilerParams(
            dimension_semantics=("parallel", "arbitrary", "arbitrary"),
            vmem_limit_bytes=budget,
        ),
    )(x, w1, b1, w2, b2)


def se_connect_ref(x, w1, b1, w2, b2):
    xf = x.astype(jnp.float32)
    mean = jnp.mean(xf, axis=2)
    h = jnp.maximum(mean @ w1 + b1, 0.0)
    s = jax.nn.sigmoid(h @ w2 + b2)
    return (xf * s[:, :, None]).astype(x.dtype)


if __name__ == "__main__":
    key = jax.random.PRNGKey(0)
    kx, k1, k2, k3, k4, ky, kz = jax.random.split(key, 7)

    # Small shapes consistent with SE_Connect over (B, C, T).
    B, C, D = 2, 64, 32
    w1 = jax.random.normal(k1, (C, D), dtype=jnp.float32) * 0.1
    b1 = jax.random.normal(k2, (1, D), dtype=jnp.float32) * 0.1
    w2 = jax.random.normal(k3, (D, C), dtype=jnp.float32) * 0.1
    b2 = jax.random.normal(k4, (1, C), dtype=jnp.float32) * 0.1

    # Case 1: f32, lane-dense T (multiple of 128).
    T1 = 256
    x1 = jax.random.normal(kx, (B, C, T1), dtype=jnp.float32)
    out1 = jax.block_until_ready(se_connect(x1, w1, b1, w2, b2))
    ref1 = se_connect_ref(x1, w1, b1, w2, b2)
    assert out1.shape == (B, C, T1)
    assert jnp.allclose(out1, ref1, atol=1e-4, rtol=1e-4), "mismatch (f32, T=256)"

    # Case 2: f32, ragged T -- full-extent last-dim block, no pad/slice passes.
    T2 = 200
    x2 = jax.random.normal(ky, (B, C, T2), dtype=jnp.float32)
    out2 = jax.block_until_ready(se_connect(x2, w1, b1, w2, b2))
    ref2 = se_connect_ref(x2, w1, b1, w2, b2)
    assert out2.shape == (B, C, T2)
    assert jnp.allclose(out2, ref2, atol=1e-4, rtol=1e-4), "mismatch (f32, T=200)"

    # Case 3: bf16 I/O (halves HBM traffic; kernel math stays f32 internally).
    x3 = x1.astype(jnp.bfloat16)
    out3 = jax.block_until_ready(se_connect(x3, w1, b1, w2, b2))
    ref3 = se_connect_ref(x3, w1, b1, w2, b2)
    assert out3.dtype == jnp.bfloat16
    assert jnp.allclose(out3.astype(jnp.float32), ref3.astype(jnp.float32),
                        atol=2e-2, rtol=2e-2), "mismatch (bf16, T=256)"

    # Case 4: two-pass (T-tiled) production path, forced at small shapes so the
    # VMEM-bounded structure is exercised (includes a masked partial T tile).
    T4 = 330
    x4 = jax.random.normal(kz, (B, C, T4), dtype=jnp.float32)
    out4 = jax.block_until_ready(se_connect(x4, w1, b1, w2, b2, force_two_pass=True))
    ref4 = se_connect_ref(x4, w1, b1, w2, b2)
    assert out4.shape == (B, C, T4)
    assert jnp.allclose(out4, ref4, atol=1e-4, rtol=1e-4), "mismatch (two-pass, T=330)"

    print("KERNEL_OK")
</pallas_src>

<mosaic_0001>
module attributes {stable_mosaic.version = 11 : i64} {
  func.func @_se_single_pass_kernel(%arg0: i32, %arg1: memref<1x64x256xf32, #tpu.memory_space<vmem>>, %arg2: memref<64x32xf32, #tpu.memory_space<vmem>>, %arg3: memref<1x32xf32, #tpu.memory_space<vmem>>, %arg4: memref<32x64xf32, #tpu.memory_space<vmem>>, %arg5: memref<1x64xf32, #tpu.memory_space<vmem>>, %arg6: memref<1x64x256xf32, #tpu.memory_space<vmem>>) attributes {dimension_semantics = [#tpu.dimension_semantics<parallel>], iteration_bounds = array<i64: 2>, scalar_prefetch = 0 : i64, scratch_operands = 0 : i64, tpu.core_type = #tpu.core_type<tc>, window_params = [{transform_indices = @transform_0, window_bounds = array<i64: 1, 64, 256>}, {pipeline_mode = #tpu.pipeline_mode<synchronous>, transform_indices = @transform_1, window_bounds = array<i64: 64, 32>}, {pipeline_mode = #tpu.pipeline_mode<synchronous>, transform_indices = @transform_2, window_bounds = array<i64: 1, 32>}, {pipeline_mode = #tpu.pipeline_mode<synchronous>, transform_indices = @transform_3, window_bounds = array<i64: 32, 64>}, {pipeline_mode = #tpu.pipeline_mode<synchronous>, transform_indices = @transform_4, window_bounds = array<i64: 1, 64>}, {transform_indices = @transform_5, window_bounds = array<i64: 1, 64, 256>}]} {
    %c0 = arith.constant 0 : index
    %c0_0 = arith.constant 0 : index
    %c0_1 = arith.constant 0 : index
    %0 = vector.load %arg1[%c0, %c0_0, %c0_1] : memref<1x64x256xf32, #tpu.memory_space<vmem>>, vector<1x64x256xf32>
    %cst = arith.constant dense<0.000000e+00> : vector<1x64xf32>
    %1 = vector.multi_reduction <add>, %0, %cst [2] : vector<1x64x256xf32> to vector<1x64xf32>
    %cst_2 = arith.constant 3.906250e-03 : f32
    %2 = vector.broadcast %cst_2 : f32 to vector<1x64xf32>
    %3 = arith.mulf %1, %2 : vector<1x64xf32>
    %c0_3 = arith.constant 0 : index
    %c0_4 = arith.constant 0 : index
    %4 = vector.load %arg2[%c0_3, %c0_4] : memref<64x32xf32, #tpu.memory_space<vmem>>, vector<64x32xf32>
    %cst_5 = arith.constant dense<0.000000e+00> : vector<1x32xf32>
    %5 = tpu.matmul %3, %4, %cst_5 {dimension_numbers = #tpu.dot_dimension_numbers<[1], [0], [0], [1], [0, 0, 1, 1], [], []>} : vector<1x64xf32>, vector<64x32xf32>, vector<1x32xf32> -> vector<1x32xf32>
    %c0_6 = arith.constant 0 : index
    %c0_7 = arith.constant 0 : index
    %6 = vector.load %arg3[%c0_6, %c0_7] : memref<1x32xf32, #tpu.memory_space<vmem>>, vector<1x32xf32>
    %7 = arith.addf %5, %6 : vector<1x32xf32>
    %cst_8 = arith.constant 0.000000e+00 : f32
    %8 = vector.broadcast %cst_8 : f32 to vector<1x32xf32>
    %9 = arith.maximumf %7, %8 : vector<1x32xf32>
    %c0_9 = arith.constant 0 : index
    %c0_10 = arith.constant 0 : index
    %10 = vector.load %arg4[%c0_9, %c0_10] : memref<32x64xf32, #tpu.memory_space<vmem>>, vector<32x64xf32>
    %cst_11 = arith.constant dense<0.000000e+00> : vector<1x64xf32>
    %11 = tpu.matmul %9, %10, %cst_11 {dimension_numbers = #tpu.dot_dimension_numbers<[1], [0], [0], [1], [0, 0, 1, 1], [], []>} : vector<1x32xf32>, vector<32x64xf32>, vector<1x64xf32> -> vector<1x64xf32>
    %c0_12 = arith.constant 0 : index
    %c0_13 = arith.constant 0 : index
    %12 = vector.load %arg5[%c0_12, %c0_13] : memref<1x64xf32, #tpu.memory_space<vmem>>, vector<1x64xf32>
    %13 = arith.addf %11, %12 : vector<1x64xf32>
    %14 = arith.negf %13 : vector<1x64xf32>
    %15 = math.exp %14 : vector<1x64xf32>
    %cst_14 = arith.constant 1.000000e+00 : f32
    %16 = vector.broadcast %cst_14 : f32 to vector<1x64xf32>
    %17 = arith.addf %16, %15 : vector<1x64xf32>
    %18 = arith.divf %16, %17 : vector<1x64xf32>
    %c0_15 = arith.constant 0 : index
    %c0_16 = arith.constant 0 : index
    %c0_17 = arith.constant 0 : index
    %19 = vector.load %arg1[%c0_15, %c0_16, %c0_17] : memref<1x64x256xf32, #tpu.memory_space<vmem>>, vector<1x64x256xf32>
    %20 = vector.shape_cast %18 : vector<1x64xf32> to vector<1x64x1xf32>
    %21 = vector.broadcast %20 : vector<1x64x1xf32> to vector<1x64x256xf32>
    %22 = arith.mulf %19, %21 : vector<1x64x256xf32>
    %c0_18 = arith.constant 0 : index
    %c0_19 = arith.constant 0 : index
    %c0_20 = arith.constant 0 : index
    %23 = vector.load %arg6[%c0_18, %c0_19, %c0_20] : memref<1x64x256xf32, #tpu.memory_space<vmem>>, vector<1x64x256xf32>
    tpu.vector_store %arg6[%c0_18, %c0_19, %c0_20], %22 {strides = array<i32>} : memref<1x64x256xf32, #tpu.memory_space<vmem>>, vector<1x64x256xf32>,
    return
  }
  func.func @transform_0(%arg0: i32) -> (i32, i32, i32) {
    %c0_i32 = arith.constant 0 : i32
    %c0_i32_0 = arith.constant 0 : i32
    %c0_i32_1 = arith.constant 0 : i32
    return %arg0, %c0_i32, %c0_i32_0 : i32, i32, i32
  }
  func.func @transform_1(%arg0: i32) -> (i32, i32) {
    %c0_i32 = arith.constant 0 : i32
    %c0_i32_0 = arith.constant 0 : i32
    %c0_i32_1 = arith.constant 0 : i32
    return %c0_i32, %c0_i32_0 : i32, i32
  }
  func.func @transform_2(%arg0: i32) -> (i32, i32) {
    %c0_i32 = arith.constant 0 : i32
    %c0_i32_0 = arith.constant 0 : i32
    %c0_i32_1 = arith.constant 0 : i32
    return %c0_i32, %c0_i32_0 : i32, i32
  }
  func.func @transform_3(%arg0: i32) -> (i32, i32) {
    %c0_i32 = arith.constant 0 : i32
    %c0_i32_0 = arith.constant 0 : i32
    %c0_i32_1 = arith.constant 0 : i32
    return %c0_i32, %c0_i32_0 : i32, i32
  }
  func.func @transform_4(%arg0: i32) -> (i32, i32) {
    %c0_i32 = arith.constant 0 : i32
    %c0_i32_0 = arith.constant 0 : i32
    %c0_i32_1 = arith.constant 0 : i32
    return %c0_i32, %c0_i32_0 : i32, i32
  }
  func.func @transform_5(%arg0: i32) -> (i32, i32, i32) {
    %c0_i32 = arith.constant 0 : i32
    %c0_i32_0 = arith.constant 0 : i32
    %c0_i32_1 = arith.constant 0 : i32
    return %arg0, %c0_i32, %c0_i32_0 : i32, i32, i32
  }
}

</mosaic_0001>

<bundles_post_ra>
// kernel: tpu_custom_call.1
= control target key start
LH: loop header
LB: loop body
LE: loop exit
PB: predicated region body
PF: predicated region fallthrough
CT: control target
= control target key end

     0   :  { %10 = vsyncpa [#allocation3], 0  ;;  %s1254_s0 = inlined_call_operand.hbm [shape: f32[2,64,256], index: 0, kind: input, shape index: {}]   ;;  %s1255_s1 = inlined_call_operand.vmem [shape: f32[64,32], index: 1, kind: input, shape index: {}]   ;;  %s1256_s2 = inlined_call_operand.vmem [shape: f32[1,32], index: 2, kind: input, shape index: {}]   ;;  %s1257_s3 = inlined_call_operand.vmem [shape: f32[32,64], index: 3, kind: input, shape index: {}]   ;;  %s1258_s4 = inlined_call_operand.vmem [shape: f32[1,64], index: 4, kind: input, shape index: {}]   ;;  %s1259_s5 = inlined_call_operand.hbm [shape: f32[2,64,256], index: 5, kind: output, shape index: {}]  }
   0x1   :  { %12 = vsyncpa [#allocation3 + $0x1], 0 }
   0x2   :  { %13 = vsyncpa [#allocation4], 0 }
   0x3   :  { %15 = vsyncpa [#allocation4 + $0x1], 0  ;;  %s951_s18 = smov 0   ;;  %s953_s19 = smov 0  }
   0x4   :  { %s955_s20 = smov 0   ;;  %s957_s21 = smov 0  }
   0x5 LB: > { %s972_s22 = sadd.s32 4294967295, %s910_s21   ;;  %s676_s23 = sadd.s32 4294967294, %s910_s21   ;;  %s910_s21 = sphi %s957_s21, %s1272_s21   ;;  %s906_s20 = sphi %s955_s20, %s1271_s20   ;;  %s902_s19 = sphi %s953_s19, %s1270_s19   ;;  %s898_s18 = sphi %s951_s18, %s1269_s18  }
   0x6   : > { %s976_s24 = sadd.s32 1, %s910_s21   ;;  %s28_s25 = sadd.s32 1, %s906_s20 }
   0x7   : > { %s25_s26 = ssub.s32 %s910_s21, %s976_s24  ;;  %p35_p0 = scmp.ne.s32.totalorder %s906_s20, %s902_s19 }
   0x8   : > { %p26_p1 = scmp.eq.s32.totalorder %s25_s26, 0  ;;  %p36_p2 = scmp.eq.s32.totalorder %s910_s21, 0 }
   0x9   : > { %p41_p3 = scmp.ne.s32.totalorder %s902_s19, %s898_s18  ;;  %p42_p4 = scmp.eq.s32.totalorder %s972_s22, 0 }
   0xa   : > { %s988_s27 = scalar_select %p26_p1, %s906_s20, %s28_s25  }
   0xb   : > { %p990_p5 = por %p36_p2, %p35_p0  ;;  %p994_p6 = por %p42_p4, %p41_p3 }
   0xc   : > { %p149_p7 = scmp.eq.s32.totalorder %s972_s22, 1  ;;  %p155_p8 = scmp.eq.s32.totalorder %s676_s23, 1 }
   0xd   : > { %p769_p10 = scmp.lt.s32.totalorder %s910_s21, 2  ;;  %s187_s7 = sand.u32 1, %s906_s20  }
   0xe   : > { %p1001_p11 = por %p149_p7, %p35_p0  ;;  %p1005_p12 = por %p155_p8, %p41_p3 }
   0xf   : > { %s693_s8 = sshll.u32 %s910_s21, 11  ;;  %s679_s9 = sshll.u32 %s187_s7, 7 }
  0x10   : > { %s1263_s30 = scalar_select %p1001_p11, 1, 0 }
  0x11   : > { %s1264_s6 = scalar_select %p1005_p12, 1, 0 }
  0x12   : > { %s1014_s12 = scalar_lea.hbm %s1254_s0, %s693_s8  ;;  %s191_s13 = scalar_lea.vmem [#allocation2], %s679_s9 }
  0x13   : > { %s198_s14 = sshll.u32 %s191_s13, 4  ;;  %p1018_p13 = pnand %p769_p10, %p990_p5  ;;  %s1022_s14 = int_to_ptr.vmem [resolvable:$true] %s198_s14 }
  0x14   : > { %s1024_s16 = scalar_lea.sflag [#allocation3], %s187_s7  ;;  %s814_s17 = scalar_lea.hbm %s1014_s12, 2048 }
  0x15   : > { %p815_p0 = scmp.ne.s32.totalorder %s1014_s12, %s814_s17  ;;  %p816_p1 = pneg %p1018_p13 }
  0x16   : > { %s819_s26 = scalar_lea.hbm %s1254_s0, 4096  ;;  %p820_p4 = scmp.lt.u32.totalorder %s1014_s12, %s1254_s0 }
  0x17   : > { %p817_p2 = pnand %p816_p1, %p815_p0  ;;  %p821_p5 = scmp.lt.u32.totalorder %s819_s26, %s814_s17 }
  0x18   : > { %p823_p8 = scmp.lt.u32.totalorder %s814_s17, %s1014_s12 }
  0x19   : > { %p818_p3 = pneg %p817_p2  ;;  %p822_p7 = por %p821_p5, %p820_p4 }
  0x1b   : > { %p824_p10 = por %p823_p8, %p822_p7 }
  0x1d   : > { %p825_p9 = pnand %p824_p10, %p818_p3 }
  0x1f   : > { %828 = shalt.err (!%p825_p9)
}
  0x20   : > { %s829_s7 = scalar_lea.vmem %s1022_s14, 2048  ;;  %s912_s9 = smov [#allocation2]  }
  0x21   : > { %p830_p0 = scmp.ne.s32.totalorder %s1022_s14, %s829_s7  ;;  %s834_s10 = sshll.u32 %s912_s9, 4  ;;  %s835_s10 = int_to_ptr.vmem [resolvable:$false] %s834_s10 }
  0x22   : > { %s836_s11 = scalar_lea.vmem %s835_s10, 4096  ;;  %p837_p11 = scmp.lt.s32.totalorder %s1022_s14, %s835_s10 }
  0x23   : > { %p832_p2 = pnand %p830_p0, %p816_p1  ;;  %p838_p4 = scmp.lt.s32.totalorder %s836_s11, %s829_s7 }
  0x25   : > { %p833_p12 = pneg %p832_p2  ;;  %p839_p5 = por %p838_p4, %p837_p11 }
  0x27   : > { %p840_p7 = pnand %p839_p5, %p833_p12 }
  0x29   : > { %843 = shalt.err (!%p840_p7)
}
  0x2a   : > { %s913_s13 = smov 256   ;;  %s914_s17 = smov 16  }
  0x2b   : > { %764 = dma.hbm_to_vmem [thread:$0]  (!%p1018_p13), %s1014_s12, 2048, %s1022_s14, %s1024_s16, %s913_s13, %s913_s13, %s914_s17  }
  0x2c   : > { %p682_p9 = scmp.ge.s32.totalorder %s910_s21, 1  ;;  %p206_p1 = scmp.lt.s32.totalorder %s910_s21, 3 }
  0x2e   : > { %p207_p3 = pnand %p682_p9, %p206_p1 }
  0x2f   : > { %s1055_s23 = sand.u32 (!%p207_p3), 1, %s902_s19  }
  0x30   : > { %210 = sbr.rel (%p207_p3) target bundleno = 825 (0x339), region = 40  ;;  %s683_s25 = sshll.u32 (!%p207_p3), %s1055_s23, 7 }
  0x31   : > { %s213_s26 = scalar_lea.sflag (!%p207_p3), [#allocation3], %s1055_s23  ;;  %s216_s28 = scalar_lea.vmem (!%p207_p3), [#allocation2], %s683_s25 }
  0x37   : > { %889 = dma.done.wait (%p994_p6), %s213_s26, 2048  }
  0x38   : > { %891 = vsyncadd (%p994_p6), %s213_s26, 4294965248  ;;  %v1065_v0 = vld [vmem:[%s216_s28] sm:$0xff]  ;;  %v1067_v1 = vld [vmem:[%s216_s28 + $0x8] sm:$0xff]  ;;  %v915_v27 = vmov 0.0|0.0   ;;  %vm916_vm0 = vmmov 0   ;;  %v917_v37 = vmov 0.0   ;;  %v308_v41 = vlaneseq }
  0x39   : > { %v1069_v2 = vld [vmem:[%s216_s28 + $0x20] sm:$0xff]  ;;  %v259_v3 = vadd.f32 %v1067_v1, %v1065_v0  ;;  %v1073_v4 = vld [vmem:[%s216_s28 + $0x28] sm:$0xff]  ;;  %v1075_v5 = vld [vmem:[%s216_s28 + $0x10] sm:$0xff]  ;;  %739 = vmatprep.subr.bf16.mxu0 %v915_v27  ;;  %751 = vmatprep.subr.bf16.mxu1 %v915_v27  ;;  %vm319_vm1 = vcmask 130112   ;;  %vm326_vm2 = vcmask 195712   ;;  %vm333_vm3 = vcmask 261312  }
  0x3a   : > { %v1077_v6 = vld [vmem:[%s216_s28 + $0x18] sm:$0xff]  ;;  %v265_v7 = vadd.f32 %v1073_v4, %v1069_v2  ;;  %v1081_v8 = vld [vmem:[%s216_s28 + $0x30] sm:$0xff]  ;;  %v1089_v12 = vld [vmem:[%s216_s28 + $0x40] sm:$0xff]  ;;  %725 = vmatprep.mubr.msk.f32.mxu0 %vm916_vm0, %v917_v37  ;;  %736 = vmatprep.mubr.msk.f32.mxu1 %vm916_vm0, %v917_v37  ;;  %v309_v42 = vand.u32 127, %v308_v41  ;;  %v1143_v43 = vshrl.u32 %v308_v41, 7  ;;  %vm340_vm4 = vcmask 326912  }
  0x3b   : > { %v1083_v9 = vld [vmem:[%s216_s28 + $0x38] sm:$0xff]  ;;  %260 = vadd.xlane.f32.xlu0 %v259_v3  ;;  %v262_v10 = vadd.f32 %v1077_v6, %v1075_v5  ;;  %v1091_v13 = vld [vmem:[%s216_s28 + $0x48] sm:$0xff]  ;;  %v1093_v14 = vld [vmem:[%s216_s28 + $0x50] sm:$0xff]  ;;  %vm347_vm5 = vcmask 392512   ;;  %vm354_vm6 = vcmask 458112   ;;  %vm361_vm7 = vcmask 523712  }
  0x3c   : > { %266 = vadd.xlane.f32.xlu1 %v265_v7  ;;  %v268_v11 = vadd.f32 %v1083_v9, %v1081_v8  ;;  %v1095_v15 = vld [vmem:[%s216_s28 + $0x58] sm:$0xff]  ;;  %v271_v16 = vadd.f32 %v1091_v13, %v1089_v12  ;;  %v1101_v18 = vld [vmem:[%s216_s28 + $0x60] sm:$0xff]  ;;  %v1103_v19 = vld [vmem:[%s216_s28 + $0x68] sm:$0xff]  ;;  %v314_v44 = vadd.s32 4294967288, %v309_v42  ;;  %v321_v46 = vadd.s32 4294967280, %v309_v42  ;;  %s1173_s29 = scalar_lea.vmem [#allocation5], %s683_s25 }
  0x3d   : > { %v274_v17 = vadd.f32 %v1095_v15, %v1093_v14  ;;  %v1105_v20 = vld [vmem:[%s216_s28 + $0x70] sm:$0xff]  ;;  %v1107_v21 = vld [vmem:[%s216_s28 + $0x78] sm:$0xff]  ;;  %v277_v22 = vadd.f32 %v1103_v19, %v1101_v18  ;;  %v291_v24 = vld [vmem:[%s1255_s1] sm:$0xff]  ;;  %v328_v47 = vadd.s32 4294967272, %v309_v42  ;;  %v312_v49 = vsub.s32 %v309_v42, %v1143_v43  ;;  %s694_s25 = sshll.u32 %s972_s22, 11  ;;  %s603_s12 = sshll.u32 %s1173_s29, 4  ;;  %s1206_s12 = int_to_ptr.vmem [resolvable:$true] %s603_s12 }
  0x3e   : > { %v280_v23 = vadd.f32 %v1107_v21, %v1105_v20  ;;  %v292_v25 = vld [vmem:[%s1255_s1 + $0x8] sm:$0xff]  ;;  %v293_v28 = vld [vmem:[%s1255_s1 + $0x10] sm:$0xff]  ;;  %v294_v29 = vld [vmem:[%s1255_s1 + $0x18] sm:$0xff]  ;;  %v317_v51 = vsub.s32 %v314_v44, %v1143_v43  ;;  %v335_v52 = vadd.s32 4294967264, %v309_v42  ;;  %v324_v53 = vsub.s32 %v321_v46, %v1143_v43  ;;  %s1204_s16 = scalar_lea.hbm %s1259_s5, %s694_s25  ;;  %s590_s22 = scalar_lea.sflag [#allocation4], %s1055_s23 }
  0x3f   : > { %263 = vadd.xlane.f32.xlu0 %v262_v10  ;;  %v740_v26 = vpack.c.bf16 %v292_v25, %v291_v24  ;;  %v743_v30 = vpack.c.bf16 %v294_v29, %v293_v28  ;;  %v295_v31 = vld [vmem:[%s1255_s1 + $0x20] sm:$0xff]  ;;  %v296_v32 = vld [vmem:[%s1255_s1 + $0x28] sm:$0xff]  ;;  %v297_v34 = vld [vmem:[%s1255_s1 + $0x30] sm:$0xff]  ;;  %v331_v56 = vsub.s32 %v328_v47, %v1143_v43  ;;  %v342_v57 = vadd.s32 4294967256, %v309_v42  ;;  %s844_s8 = scalar_lea.vmem %s1206_s12, 2048  ;;  %p1266_p11 = scmp.ne.s32.totalorder %s1263_s30, 0 }
  0x40   : > { %269 = vadd.xlane.f32.xlu1 %v268_v11  ;;  %v746_v33 = vpack.c.bf16 %v296_v32, %v295_v31  ;;  %v298_v35 = vld [vmem:[%s1255_s1 + $0x38] sm:$0xff]  ;;  %v437_v38 = vld [vmem:[%s1257_s3] sm:$0xff]  ;;  %v438_v39 = vld [vmem:[%s1257_s3 + $0x8] sm:$0xff]  ;;  %v338_v63 = vsub.s32 %v335_v52, %v1143_v43  ;;  %v349_v3 = vadd.s32 4294967248, %v309_v42  ;;  %vm363_vm8 = vcmask 523264   ;;  %p845_p6 = scmp.ne.s32.totalorder %s1206_s12, %s844_s8  ;;  %s918_s7 = smov [#allocation5]  }
  0x41   : > { %741 = vmatpush3.bf16.msra.mxu0 %v740_v26  ;;  %v749_v36 = vpack.c.bf16 %v298_v35, %v297_v34  ;;  %v752_v40 = vpack.c.bf16 %v438_v39, %v437_v38  ;;  %v440_v44 = vld [vmem:[%s1257_s3 + $0x18] sm:$0xff]  ;;  %v299_v46 = vld [vmem:[%s1256_s2] sm:$0x1]  ;;  %vm442_vm9 = vcmask 261120   ;;  %s848_s9 = sshll.u32 %s918_s7, 4  ;;  %s849_s9 = int_to_ptr.vmem [resolvable:$false] %s848_s9 }
  0x42   : > { %742 = vmatprep.subr.bf16.mxu0 %v915_v27  ;;  %v352_v29 = vsub.s32 %v349_v3, %v1143_v43  ;;  %p846_p12 = pnand %p845_p6, %p1266_p11  ;;  %s850_s10 = scalar_lea.vmem %s849_s9, 4096 }
  0x43   : > { %272 = vadd.xlane.f32.xlu0 %v271_v16  ;;  %753 = vmatpush3.bf16.msra.mxu1 %v752_v40  ;;  %v345_v16 = vsub.s32 %v342_v57, %v1143_v43  ;;  %p851_p8 = scmp.lt.s32.totalorder %s1206_s12, %s849_s9  ;;  %p852_p10 = scmp.lt.s32.totalorder %s850_s10, %s844_s8 }
  0x44   : > { %275 = vadd.xlane.f32.xlu1 %v274_v17  ;;  %754 = vmatprep.subr.bf16.mxu1 %v915_v27  ;;  %v356_v17 = vadd.s32 4294967240, %v309_v42  ;;  %v439_v42 = vld [vmem:[%s1257_s3 + $0x10] sm:$0xff]  ;;  %p847_p13 = pneg %p846_p12 }
  0x45   : > { %744 = vmatpush3.bf16.msra.mxu0 %v743_v30  ;;  %p853_p0 = por %p852_p10, %p851_p8 }
  0x46   : > { %745 = vmatprep.subr.bf16.mxu0 %v915_v27  ;;  %v359_v32 = vsub.s32 %v356_v17, %v1143_v43 }
  0x47   : > { %278 = vadd.xlane.f32.xlu0 %v277_v22  ;;  %p854_p2 = pnand %p853_p0, %p847_p13 }
  0x48   : > { %281 = vadd.xlane.f32.xlu1 %v280_v23 }
  0x49   : > { %747 = vmatpush3.bf16.msra.mxu0 %v746_v33 }
  0x4a   : > { %748 = vmatprep.subr.bf16.mxu0 %v915_v27 }
  0x4d   : > { %750 = vmatpush3.bf16.msra.mxu0 %v749_v36 }
  0xc8   : > { %v261_v45 = vpop.xlane.xlu0 %260 }
  0xc9   : > { %v267_v48 = vpop.xlane.xlu1 %266  ;;  %v283_v50 = vmul.f32 0.00390625, %v261_v45  ;;  %v755_v45 = vpack.c.bf16 %v440_v44, %v439_v42 }
  0xca   : > { %v285_v54 = vmul.f32 0.00390625, %v267_v48 }
  0xcb   : > { %v313_v61 = vrot.slane %v283_v50, %v312_v49  ;;  %756 = vmatpush3.bf16.msra.mxu1 %v755_v45 }
  0xcc   : > { %v264_v55 = vpop.xlane.xlu0 %263  ;;  %v325_v7 = vrot.slane %v285_v54, %v324_v53 }
  0xcd   : > { %v284_v58 = vmul.f32 0.00390625, %v264_v55  ;;  %v270_v59 = vpop.xlane.xlu1 %269 }
  0xce   : > { %v286_v60 = vmul.f32 0.00390625, %v270_v59 }
  0xcf   : > { %v318_v62 = vrot.slane %v284_v58, %v317_v51  ;;  %v441_v51 = vld [vmem:[%s1258_s4] sm:$0x1]  ;;  %v524_v58 = vsub.s32 0, %v1143_v43 }
  0xd0   : > { %v332_v10 = vrot.slane %v286_v60, %v331_v56  ;;  %v273_v11 = vpop.xlane.xlu0 %272 }
  0xd1   : > { %v320_v22 = vsel %vm319_vm1, %v318_v62, %v313_v61  ;;  %v287_v23 = vmul.f32 0.00390625, %v273_v11  ;;  %v276_v24 = vpop.xlane.xlu1 %275 }
  0xd2   : > { %v327_v25 = vsel %vm326_vm2, %v325_v7, %v320_v22  ;;  %v288_v26 = vmul.f32 0.00390625, %v276_v24 }
  0xd3   : > { %v334_v27 = vsel %vm333_vm3, %v332_v10, %v327_v25  ;;  %v339_v28 = vrot.slane %v287_v23, %v338_v63 }
  0xd4   : > { %v346_v30 = vrot.slane %v288_v26, %v345_v16  ;;  %v279_v31 = vpop.xlane.xlu0 %278 }
  0xd5   : > { %v341_v33 = vsel %vm340_vm4, %v339_v28, %v334_v27  ;;  %v289_v34 = vmul.f32 0.00390625, %v279_v31  ;;  %v282_v35 = vpop.xlane.xlu1 %281 }
  0xd6   : > { %v290_v36 = vmul.f32 0.00390625, %v282_v35  ;;  %v348_v38 = vsel %vm347_vm5, %v346_v30, %v341_v33 }
  0xd7   : > { %v353_v37 = vrot.slane %v289_v34, %v352_v29 }
  0xd8   : > { %v360_v39 = vrot.slane %v290_v36, %v359_v32 }
  0xd9   : > { %v355_v40 = vsel %vm354_vm6, %v353_v37, %v348_v38 }
  0xda   : > { %v362_v41 = vsel %vm361_vm7, %v360_v39, %v355_v40 }
  0xdb   : > { %726 = vmatmul.mubr.msk.f32.vlgmr.msra.gmra.mrb[0].mxu0 %vm363_vm8, %v362_v41 }
 0x1ae   : > { %v432_v47 = vpop.f32.mrb[0].mxu0 }
 0x1af   : > { %v433_v48 = vadd.f32 %v432_v47, %v299_v46  ;;  %v727_v49 = vpop.f32.mrb[1].mxu0 }
 0x1b1   : > { %v436_v50 = vmax.f32 %v433_v48, 0.0 }
 0x1b3   : > { %737 = vmatmul.mubr.msk.f32.vlgmr.msra.gmra.mrb[0].mxu1 %vm442_vm9, %v436_v50 }
 0x286   : > { %v512_v52 = vpop.f32.mrb[0].mxu1 }
 0x287   : > { %v513_v53 = vadd.f32 %v512_v52, %v441_v51  ;;  %v738_v54 = vpop.f32.mrb[1].mxu1 }
 0x289   : > { %v687_v55 = vmul.f32 -1.442695, %v513_v53 }
 0x28b   : > { %810 = vpow2.f32 %v687_v55 }
 0x295   : > { %v811_v56 = vpop.eup %810 }
 0x296   : > { %v519_v57 = vadd.f32 1.0, %v811_v56 }
 0x298   : > { %812 = vrcp.f32 %v519_v57 }
 0x2a2   : > { %v813_v59 = vpop.eup %812 }
 0x2a3   : > { %v525_v60 = vrot.slane %v813_v59, %v524_v58 }
 0x2a5   : > { %531 = vbcast.lane.b32.xlu1 %v525_v60, 264  ;;  %527 = vbcast.lane.b32.xlu0 %v525_v60, 256 }
 0x2a9   : > { %535 = vbcast.lane.b32.xlu1 %v525_v60, 272  ;;  %543 = vbcast.lane.b32.xlu0 %v525_v60, 288 }
 0x2ad   : > { %539 = vbcast.lane.b32.xlu1 %v525_v60, 280  ;;  %551 = vbcast.lane.b32.xlu0 %v525_v60, 304 }
 0x2b1   : > { %547 = vbcast.lane.b32.xlu1 %v525_v60, 296 }
 0x2b5   : > { %555 = vbcast.lane.b32.xlu1 %v525_v60, 312 }
 0x317   : > { %v532_v61 = vpop.permute.xlu1 %531  ;;  %v528_v62 = vpop.permute.xlu0 %527 }
 0x318   : > { %v559_v63 = vmul.f32 %v532_v61, %v1075_v5  ;;  %v560_v3 = vmul.f32 %v532_v61, %v1077_v6  ;;  %v557_v7 = vmul.f32 %v528_v62, %v1065_v0  ;;  %v558_v43 = vmul.f32 %v528_v62, %v1067_v1 }
 0x31a   : > { %575 = vst [vmem:[%s1173_s29 + $0x10] sm:$0xff] %v559_v63  ;;  %576 = vst [vmem:[%s1173_s29 + $0x18] sm:$0xff] %v560_v3 }
 0x31b   : > { %573 = vst [vmem:[%s1173_s29] sm:$0xff] %v557_v7  ;;  %574 = vst [vmem:[%s1173_s29 + $0x8] sm:$0xff] %v558_v43  ;;  %v536_v5 = vpop.permute.xlu1 %535  ;;  %v544_v0 = vpop.permute.xlu0 %543 }
 0x31c   : > { %v561_v1 = vmul.f32 %v536_v5, %v1069_v2  ;;  %v562_v6 = vmul.f32 %v536_v5, %v1073_v4  ;;  %v565_v10 = vmul.f32 %v544_v0, %v1089_v12  ;;  %v566_v11 = vmul.f32 %v544_v0, %v1091_v13 }
 0x31e   : > { %577 = vst [vmem:[%s1173_s29 + $0x20] sm:$0xff] %v561_v1  ;;  %578 = vst [vmem:[%s1173_s29 + $0x28] sm:$0xff] %v562_v6 }
 0x31f   : > { %581 = vst [vmem:[%s1173_s29 + $0x40] sm:$0xff] %v565_v10  ;;  %582 = vst [vmem:[%s1173_s29 + $0x48] sm:$0xff] %v566_v11  ;;  %v540_v16 = vpop.permute.xlu1 %539  ;;  %v552_v17 = vpop.permute.xlu0 %551 }
 0x320   : > { %v563_v2 = vmul.f32 %v540_v16, %v1081_v8  ;;  %v564_v22 = vmul.f32 %v540_v16, %v1083_v9  ;;  %v569_v4 = vmul.f32 %v552_v17, %v1101_v18  ;;  %v570_v12 = vmul.f32 %v552_v17, %v1103_v19 }
 0x322   : > { %579 = vst [vmem:[%s1173_s29 + $0x30] sm:$0xff] %v563_v2  ;;  %580 = vst [vmem:[%s1173_s29 + $0x38] sm:$0xff] %v564_v22 }
 0x323   : > { %585 = vst [vmem:[%s1173_s29 + $0x60] sm:$0xff] %v569_v4  ;;  %586 = vst [vmem:[%s1173_s29 + $0x68] sm:$0xff] %v570_v12  ;;  %v548_v13 = vpop.permute.xlu1 %547 }
 0x324   : > { %v567_v23 = vmul.f32 %v548_v13, %v1093_v14  ;;  %v568_v24 = vmul.f32 %v548_v13, %v1095_v15 }
 0x326   : > { %583 = vst [vmem:[%s1173_s29 + $0x50] sm:$0xff] %v567_v23  ;;  %584 = vst [vmem:[%s1173_s29 + $0x58] sm:$0xff] %v568_v24 }
 0x327   : > { %v556_v8 = vpop.permute.xlu1 %555 }
 0x328   : > { %v571_v9 = vmul.f32 %v556_v8, %v1105_v20  ;;  %v572_v14 = vmul.f32 %v556_v8, %v1107_v21 }
 0x32a   : > { %587 = vst [vmem:[%s1173_s29 + $0x70] sm:$0xff] %v571_v9  ;;  %588 = vst [vmem:[%s1173_s29 + $0x78] sm:$0xff] %v572_v14 }
 0x32b   : > { %857 = shalt.err (!%p854_p2)
}
 0x32c   : > { %s858_s11 = scalar_lea.hbm %s1204_s16, 2048  ;;  %s862_s26 = scalar_lea.hbm %s1259_s5, 4096 }
 0x32d   : > { %p859_p4 = scmp.ne.s32.totalorder %s1204_s16, %s858_s11  ;;  %p863_p9 = scmp.lt.u32.totalorder %s1204_s16, %s1259_s5 }
 0x32e   : > { %p864_p1 = scmp.lt.u32.totalorder %s862_s26, %s858_s11  ;;  %p866_p6 = scmp.lt.u32.totalorder %s858_s11, %s1204_s16 }
 0x32f   : > { %p860_p5 = pnand %p859_p4, %p1266_p11 }
 0x330   : > { %p865_p3 = por %p864_p1, %p863_p9 }
 0x331   : > { %p861_p7 = pneg %p860_p5 }
 0x332   : > { %p867_p12 = por %p866_p6, %p865_p3 }
 0x334   : > { %p868_p13 = pnand %p867_p12, %p861_p7 }
 0x336   : > { %871 = shalt.err (!%p868_p13)
}
 0x337   : > { %s919_s25 = smov 256   ;;  %s920_s14 = smov 16  }
 0x338   : > { %759 = dma.vmem_to_hbm [thread:$0]  (%p1266_p11), %s1206_s12, 2048, %s1204_s16, %s590_s22, %s919_s25, %s919_s25, %s920_s14  }
 0x339 PF: > { %s618_s15 = sand.u32 1, %s898_s18   ;;  %p1267_p8 = scmp.ne.s32.totalorder %s1264_s6, 0 }
 0x33a   : > { %p1268_p10 = scmp.ge.s32.totalorder %s910_s21, 2  ;;  %s619_s8 = scalar_lea.sflag [#allocation4], %s618_s15 }
 0x33c   : > { %p766_p0 = pnand %p1268_p10, %p1267_p8 }
 0x33e   : > { %893 = dma.done.wait (!%p766_p0), %s619_s8, 2048  }
 0x33f   : > { %895 = vsyncadd (!%p766_p0), %s619_s8, 4294965248  ;;  %p18_p2 = scmp.ge.s32.totalorder %s976_s24, 4   ;;  %s1269_s18 = smov %s902_s19 }
 0x340   : > { %s1270_s19 = smov %s906_s20  ;;  %s1271_s20 = smov %s988_s27 }
 0x341   : > { %s1272_s21 = smov %s976_s24  ;;  %20 = sbr.rel (!%p18_p2) target bundleno = 5 (0x5), region = 85 }
 0x348   :  { %624 = vsyncpa [#allocation3], 1 }
 0x349   :  { %626 = vsyncpa [#allocation3 + $0x1], 1 }
 0x34a   :  { %627 = vsyncpa [#allocation4], 1 }
 0x34b   :  { %629 = vsyncpa [#allocation4 + $0x1], 1 }

</bundles_post_ra>
